<compile_context>
chip_gen: v5e
topology: v5e:2x2
jax: 0.10.0
libtpu: 0.0.40
codegen_flags: <defaults>
</compile_context>

<pallas_src>
import functools

import jax
import jax.numpy as jnp
import numpy as np
from jax.experimental import pallas as pl
from jax.experimental.pallas import tpu as pltpu


def mlp_kernel(x_ref, w1a_ref, w1b_ref, w1c_ref, b1_ref, w2_ref, b2_ref,
               wf_ref, bf_ref, o_ref):
    # x_ref:  (1, Sp, D) bf16 -- full (padded) sequence for this batch, resident across seq tiles.
    # o_ref:  (1, ts, output_dim) f32 output tile.
    ts = o_ref.shape[1]
    t = pl.program_id(1)
    start = pl.multiple_of(t * ts, 8)                      # ts is a multiple of 8 -> aligned slab
    xs = x_ref[0, pl.ds(start, ts + 8), :]                 # (ts+8, D) aligned load (Sp = n_out_p + 8)

    # Three shifted frame views of the sliding 3-frame window (static slices).
    x0 = xs[0:ts]          # frame i-1
    x1 = xs[1:ts + 1]      # frame i
    x2 = xs[2:ts + 2]      # frame i+1

    # Linear(3D -> H1) as three partial matmuls, f32 accumulation on the MXU.
    h = jnp.dot(x0, w1a_ref[...], preferred_element_type=jnp.float32)
    h = h + jnp.dot(x1, w1b_ref[...], preferred_element_type=jnp.float32)
    h = h + jnp.dot(x2, w1c_ref[...], preferred_element_type=jnp.float32)
    h = jnp.maximum(h + b1_ref[...], 0.0)                  # bias + ReLU in f32 (Dropout = id)

    h = jnp.dot(h.astype(w2_ref.dtype), w2_ref[...], preferred_element_type=jnp.float32)
    h = jnp.maximum(h + b2_ref[...], 0.0)                  # bias + ReLU in f32 (Dropout = id)

    out = jnp.dot(h.astype(wf_ref.dtype), wf_ref[...], preferred_element_type=jnp.float32)
    o_ref[0] = (out + bf_ref[...]).astype(o_ref.dtype)


@functools.partial(jax.jit, static_argnames=("output_dim", "ts"))
def mlp_network_forward(x, params, *, output_dim, ts=512):
    """Factorized MLPNetwork forward: x (B, S, D) -> y (B, S-2, output_dim)."""
    w1, b1, w2, b2, wf, bf = params
    B, S, D = x.shape
    assert S >= 3, "factorized forward needs at least 3 frames"
    assert w1.shape[0] == 3 * D

    n_out = S - 2
    # Sequence tile: multiple of 8, large (default 512), capped by the padded window count.
    ts = max(8, min(ts, ((n_out + 7) // 8) * 8))
    ts = ((ts + 7) // 8) * 8
    T = (n_out + ts - 1) // ts
    n_out_p = T * ts
    Sp = n_out_p + 8   # +2 rows needed for the window overhang; +6 more keeps slab loads 8-aligned.

    # Pad x along the sequence (cheap: ~1x x traffic, vs 3x window materialization before),
    # and cast matmul operands to bf16 once.
    x_bf = jnp.pad(x, ((0, 0), (0, Sp - S), (0, 0))).astype(jnp.bfloat16)

    H1 = w1.shape[1]
    H2 = w2.shape[1]
    # Split the first Linear weight into its three per-frame slabs: x_win @ W1 = x0@W1a + x1@W1b + x2@W1c.
    w1a = w1[:D].astype(jnp.bfloat16)
    w1b = w1[D:2 * D].astype(jnp.bfloat16)
    w1c = w1[2 * D:].astype(jnp.bfloat16)
    w2b = w2.astype(jnp.bfloat16)
    wfb = wf.astype(jnp.bfloat16)
    b1f = b1.astype(jnp.float32).reshape(1, H1)
    b2f = b2.astype(jnp.float32).reshape(1, H2)
    bff = bf.astype(jnp.float32).reshape(1, output_dim)

    flops = 2 * B * n_out_p * (3 * D * H1 + H1 * H2 + H2 * output_dim)
    bytes_accessed = (x_bf.size * 2
                      + (w1a.size + w1b.size + w1c.size + w2b.size + wfb.size) * 2
                      + (b1f.size + b2f.size + bff.size) * 4
                      + B * n_out_p * output_dim * 4)

    # VMEM budget (double-buffered x + output blocks, resident weights), with headroom;
    # floor at the 32 MiB scoped default, cap below v7x's 64 MiB physical VMEM.
    vmem_est = (2 * Sp * D * 2 + 2 * ts * output_dim * 4
                + 2 * (3 * D * H1 + H1 * H2 + H2 * output_dim) * 2
                + 2 * (H1 + H2 + output_dim) * 4)
    vmem_limit = int(min(max(4 * vmem_est + (1 << 20), 32 << 20), 60 << 20))

    out = pl.pallas_call(
        mlp_kernel,
        out_shape=jax.ShapeDtypeStruct((B, n_out_p, output_dim), jnp.float32),
        grid=(B, T),
        in_specs=[
            pl.BlockSpec((1, Sp, D), lambda b, t: (b, 0, 0)),   # per-batch x slab, resident across t
            pl.BlockSpec((D, H1), lambda b, t: (0, 0)),          # W1 frame i-1 slab
            pl.BlockSpec((D, H1), lambda b, t: (0, 0)),          # W1 frame i   slab
            pl.BlockSpec((D, H1), lambda b, t: (0, 0)),          # W1 frame i+1 slab
            pl.BlockSpec((1, H1), lambda b, t: (0, 0)),          # b1 (f32, VMEM-resident)
            pl.BlockSpec((H1, H2), lambda b, t: (0, 0)),         # W2
            pl.BlockSpec((1, H2), lambda b, t: (0, 0)),          # b2
            pl.BlockSpec((H2, output_dim), lambda b, t: (0, 0)), # Wf
            pl.BlockSpec((1, output_dim), lambda b, t: (0, 0)),  # bf
        ],
        out_specs=pl.BlockSpec((1, ts, output_dim), lambda b, t: (b, t, 0)),
        compiler_params=pltpu.CompilerParams(
            dimension_semantics=("parallel", "parallel"),
            vmem_limit_bytes=vmem_limit),
        cost_estimate=pl.CostEstimate(flops=flops, transcendentals=0,
                                      bytes_accessed=bytes_accessed),
    )(x_bf, w1a, w1b, w1c, b1f, w2b, b2f, wfb, bff)

    return out[:, :n_out, :]


def init_linear(key, in_dim, out_dim, dtype=jnp.float32):
    # PyTorch nn.Linear-style uniform init, stored as (in, out) so y = x @ W + b.
    kw, kb = jax.random.split(key)
    bound = 1.0 / np.sqrt(in_dim)
    w = jax.random.uniform(kw, (in_dim, out_dim), dtype, minval=-bound, maxval=bound)
    b = jax.random.uniform(kb, (1, out_dim), dtype, minval=-bound, maxval=bound)
    return w, b


def reference_forward(x, params):
    w1, b1, w2, b2, wf, bf = params
    B, S, D = x.shape
    outs = []
    for i in range(1, S - 1):
        f = x[:, i - 1:i + 2].reshape(B, 3 * D)
        h = jnp.maximum(f @ w1 + b1, 0.0)
        h = jnp.maximum(h @ w2 + b2, 0.0)
        outs.append(h @ wf + bf)
    return jnp.stack(outs, axis=-2)


if __name__ == "__main__":
    # Module config: input_dim=16, hidden_dims=[32, 32], output_dim=8, factorize=True.
    B, S, D = 2, 8, 16
    hidden_dims = [32, 32]
    output_dim = 8

    key = jax.random.PRNGKey(0)
    kx, k1, k2, k3 = jax.random.split(key, 4)

    x = jax.random.normal(kx, (B, S, D), jnp.float32)
    w1, b1 = init_linear(k1, 3 * D, hidden_dims[0])
    w2, b2 = init_linear(k2, hidden_dims[0], hidden_dims[1])
    wf, bf = init_linear(k3, hidden_dims[1], output_dim)
    params = (w1, b1, w2, b2, wf, bf)

    y = mlp_network_forward(x, params, output_dim=output_dim)
    y = jax.block_until_ready(y)

    y_ref = reference_forward(x, params)
    assert y.shape == (B, S - 2, output_dim), y.shape
    # bf16 matmul operands (f32 accumulation) -> loosened tolerance (expected, per review).
    np.testing.assert_allclose(np.asarray(y), np.asarray(y_ref), rtol=5e-2, atol=5e-2)

    print("KERNEL_OK")
</pallas_src>

<mosaic_0001>
module attributes {stable_mosaic.version = 11 : i64} {
  func.func @mlp_kernel(%arg0: i32, %arg1: i32, %arg2: memref<1x16x16xbf16, #tpu.memory_space<vmem>>, %arg3: memref<16x32xbf16, #tpu.memory_space<vmem>>, %arg4: memref<16x32xbf16, #tpu.memory_space<vmem>>, %arg5: memref<16x32xbf16, #tpu.memory_space<vmem>>, %arg6: memref<1x32xf32, #tpu.memory_space<vmem>>, %arg7: memref<32x32xbf16, #tpu.memory_space<vmem>>, %arg8: memref<1x32xf32, #tpu.memory_space<vmem>>, %arg9: memref<32x8xbf16, #tpu.memory_space<vmem>>, %arg10: memref<1x8xf32, #tpu.memory_space<vmem>>, %arg11: memref<1x8x8xf32, #tpu.memory_space<vmem>>) attributes {dimension_semantics = [#tpu.dimension_semantics<parallel>, #tpu.dimension_semantics<parallel>], iteration_bounds = array<i64: 2, 1>, scalar_prefetch = 0 : i64, scratch_operands = 0 : i64, tpu.core_type = #tpu.core_type<tc>, window_params = [{transform_indices = @transform_0, window_bounds = array<i64: 1, 16, 16>}, {pipeline_mode = #tpu.pipeline_mode<synchronous>, transform_indices = @transform_1, window_bounds = array<i64: 16, 32>}, {pipeline_mode = #tpu.pipeline_mode<synchronous>, transform_indices = @transform_2, window_bounds = array<i64: 16, 32>}, {pipeline_mode = #tpu.pipeline_mode<synchronous>, transform_indices = @transform_3, window_bounds = array<i64: 16, 32>}, {pipeline_mode = #tpu.pipeline_mode<synchronous>, transform_indices = @transform_4, window_bounds = array<i64: 1, 32>}, {pipeline_mode = #tpu.pipeline_mode<synchronous>, transform_indices = @transform_5, window_bounds = array<i64: 32, 32>}, {pipeline_mode = #tpu.pipeline_mode<synchronous>, transform_indices = @transform_6, window_bounds = array<i64: 1, 32>}, {pipeline_mode = #tpu.pipeline_mode<synchronous>, transform_indices = @transform_7, window_bounds = array<i64: 32, 8>}, {pipeline_mode = #tpu.pipeline_mode<synchronous>, transform_indices = @transform_8, window_bounds = array<i64: 1, 8>}, {transform_indices = @transform_9, window_bounds = array<i64: 1, 8, 8>}]} {
    %c8_i32 = arith.constant 8 : i32
    %0 = arith.muli %arg1, %c8_i32 : i32
    %1 = tpu.assume_multiple %0, 8 : i32
    %c0 = arith.constant 0 : index
    %2 = arith.index_cast %1 : i32 to index
    %c0_0 = arith.constant 0 : index
    %3 = vector.load %arg2[%c0, %2, %c0_0] : memref<1x16x16xbf16, #tpu.memory_space<vmem>>, vector<1x16x16xbf16>
    %4 = vector.shape_cast %3 : vector<1x16x16xbf16> to vector<16x16xbf16>
    %5 = vector.extract_strided_slice %4 {offsets = [0, 0], sizes = [8, 16], strides = [1, 1]} : vector<16x16xbf16> to vector<8x16xbf16>
    %6 = vector.extract_strided_slice %4 {offsets = [1, 0], sizes = [8, 16], strides = [1, 1]} : vector<16x16xbf16> to vector<8x16xbf16>
    %7 = vector.extract_strided_slice %4 {offsets = [2, 0], sizes = [8, 16], strides = [1, 1]} : vector<16x16xbf16> to vector<8x16xbf16>
    %c0_1 = arith.constant 0 : index
    %c0_2 = arith.constant 0 : index
    %8 = vector.load %arg3[%c0_1, %c0_2] : memref<16x32xbf16, #tpu.memory_space<vmem>>, vector<16x32xbf16>
    %cst = arith.constant dense<0.000000e+00> : vector<8x32xf32>
    %9 = tpu.matmul %5, %8, %cst {dimension_numbers = #tpu.dot_dimension_numbers<[1], [0], [0], [1], [0, 0, 1, 1], [], []>} : vector<8x16xbf16>, vector<16x32xbf16>, vector<8x32xf32> -> vector<8x32xf32>
    %c0_3 = arith.constant 0 : index
    %c0_4 = arith.constant 0 : index
    %10 = vector.load %arg4[%c0_3, %c0_4] : memref<16x32xbf16, #tpu.memory_space<vmem>>, vector<16x32xbf16>
    %cst_5 = arith.constant dense<0.000000e+00> : vector<8x32xf32>
    %11 = tpu.matmul %6, %10, %cst_5 {dimension_numbers = #tpu.dot_dimension_numbers<[1], [0], [0], [1], [0, 0, 1, 1], [], []>} : vector<8x16xbf16>, vector<16x32xbf16>, vector<8x32xf32> -> vector<8x32xf32>
    %12 = arith.addf %9, %11 : vector<8x32xf32>
    %c0_6 = arith.constant 0 : index
    %c0_7 = arith.constant 0 : index
    %13 = vector.load %arg5[%c0_6, %c0_7] : memref<16x32xbf16, #tpu.memory_space<vmem>>, vector<16x32xbf16>
    %cst_8 = arith.constant dense<0.000000e+00> : vector<8x32xf32>
    %14 = tpu.matmul %7, %13, %cst_8 {dimension_numbers = #tpu.dot_dimension_numbers<[1], [0], [0], [1], [0, 0, 1, 1], [], []>} : vector<8x16xbf16>, vector<16x32xbf16>, vector<8x32xf32> -> vector<8x32xf32>
    %15 = arith.addf %12, %14 : vector<8x32xf32>
    %c0_9 = arith.constant 0 : index
    %c0_10 = arith.constant 0 : index
    %16 = vector.load %arg6[%c0_9, %c0_10] : memref<1x32xf32, #tpu.memory_space<vmem>>, vector<1x32xf32>
    %17 = vector.broadcast %16 : vector<1x32xf32> to vector<8x32xf32>
    %18 = arith.addf %15, %17 : vector<8x32xf32>
    %cst_11 = arith.constant 0.000000e+00 : f32
    %19 = vector.broadcast %cst_11 : f32 to vector<8x32xf32>
    %20 = arith.maximumf %18, %19 : vector<8x32xf32>
    %21 = arith.truncf %20 : vector<8x32xf32> to vector<8x32xbf16>
    %c0_12 = arith.constant 0 : index
    %c0_13 = arith.constant 0 : index
    %22 = vector.load %arg7[%c0_12, %c0_13] : memref<32x32xbf16, #tpu.memory_space<vmem>>, vector<32x32xbf16>
    %cst_14 = arith.constant dense<0.000000e+00> : vector<8x32xf32>
    %23 = tpu.matmul %21, %22, %cst_14 {dimension_numbers = #tpu.dot_dimension_numbers<[1], [0], [0], [1], [0, 0, 1, 1], [], []>} : vector<8x32xbf16>, vector<32x32xbf16>, vector<8x32xf32> -> vector<8x32xf32>
    %c0_15 = arith.constant 0 : index
    %c0_16 = arith.constant 0 : index
    %24 = vector.load %arg8[%c0_15, %c0_16] : memref<1x32xf32, #tpu.memory_space<vmem>>, vector<1x32xf32>
    %25 = vector.broadcast %24 : vector<1x32xf32> to vector<8x32xf32>
    %26 = arith.addf %23, %25 : vector<8x32xf32>
    %cst_17 = arith.constant 0.000000e+00 : f32
    %27 = vector.broadcast %cst_17 : f32 to vector<8x32xf32>
    %28 = arith.maximumf %26, %27 : vector<8x32xf32>
    %29 = arith.truncf %28 : vector<8x32xf32> to vector<8x32xbf16>
    %c0_18 = arith.constant 0 : index
    %c0_19 = arith.constant 0 : index
    %30 = vector.load %arg9[%c0_18, %c0_19] : memref<32x8xbf16, #tpu.memory_space<vmem>>, vector<32x8xbf16>
    %cst_20 = arith.constant dense<0.000000e+00> : vector<8x8xf32>
    %31 = tpu.matmul %29, %30, %cst_20 {dimension_numbers = #tpu.dot_dimension_numbers<[1], [0], [0], [1], [0, 0, 1, 1], [], []>} : vector<8x32xbf16>, vector<32x8xbf16>, vector<8x8xf32> -> vector<8x8xf32>
    %c0_21 = arith.constant 0 : index
    %c0_22 = arith.constant 0 : index
    %32 = vector.load %arg10[%c0_21, %c0_22] : memref<1x8xf32, #tpu.memory_space<vmem>>, vector<1x8xf32>
    %33 = vector.broadcast %32 : vector<1x8xf32> to vector<8x8xf32>
    %34 = arith.addf %31, %33 : vector<8x8xf32>
    %c0_23 = arith.constant 0 : index
    %c0_24 = arith.constant 0 : index
    %c0_25 = arith.constant 0 : index
    %35 = vector.load %arg11[%c0_23, %c0_24, %c0_25] : memref<1x8x8xf32, #tpu.memory_space<vmem>>, vector<1x8x8xf32>
    %36 = vector.shape_cast %35 : vector<1x8x8xf32> to vector<8x8xf32>
    %37 = vector.shape_cast %34 : vector<8x8xf32> to vector<1x8x8xf32>
    tpu.vector_store %arg11[%c0_23, %c0_24, %c0_25], %37 {strides = array<i32>} : memref<1x8x8xf32, #tpu.memory_space<vmem>>, vector<1x8x8xf32>,
    return
  }
  func.func @transform_0(%arg0: i32, %arg1: i32) -> (i32, i32, i32) {
    %c0_i32 = arith.constant 0 : i32
    %c0_i32_0 = arith.constant 0 : i32
    %c0_i32_1 = arith.constant 0 : i32
    return %arg0, %c0_i32, %c0_i32_0 : i32, i32, i32
  }
  func.func @transform_1(%arg0: i32, %arg1: i32) -> (i32, i32) {
    %c0_i32 = arith.constant 0 : i32
    %c0_i32_0 = arith.constant 0 : i32
    %c0_i32_1 = arith.constant 0 : i32
    return %c0_i32, %c0_i32_0 : i32, i32
  }
  func.func @transform_2(%arg0: i32, %arg1: i32) -> (i32, i32) {
    %c0_i32 = arith.constant 0 : i32
    %c0_i32_0 = arith.constant 0 : i32
    %c0_i32_1 = arith.constant 0 : i32
    return %c0_i32, %c0_i32_0 : i32, i32
  }
  func.func @transform_3(%arg0: i32, %arg1: i32) -> (i32, i32) {
    %c0_i32 = arith.constant 0 : i32
    %c0_i32_0 = arith.constant 0 : i32
    %c0_i32_1 = arith.constant 0 : i32
    return %c0_i32, %c0_i32_0 : i32, i32
  }
  func.func @transform_4(%arg0: i32, %arg1: i32) -> (i32, i32) {
    %c0_i32 = arith.constant 0 : i32
    %c0_i32_0 = arith.constant 0 : i32
    %c0_i32_1 = arith.constant 0 : i32
    return %c0_i32, %c0_i32_0 : i32, i32
  }
  func.func @transform_5(%arg0: i32, %arg1: i32) -> (i32, i32) {
    %c0_i32 = arith.constant 0 : i32
    %c0_i32_0 = arith.constant 0 : i32
    %c0_i32_1 = arith.constant 0 : i32
    return %c0_i32, %c0_i32_0 : i32, i32
  }
  func.func @transform_6(%arg0: i32, %arg1: i32) -> (i32, i32) {
    %c0_i32 = arith.constant 0 : i32
    %c0_i32_0 = arith.constant 0 : i32
    %c0_i32_1 = arith.constant 0 : i32
    return %c0_i32, %c0_i32_0 : i32, i32
  }
  func.func @transform_7(%arg0: i32, %arg1: i32) -> (i32, i32) {
    %c0_i32 = arith.constant 0 : i32
    %c0_i32_0 = arith.constant 0 : i32
    %c0_i32_1 = arith.constant 0 : i32
    return %c0_i32, %c0_i32_0 : i32, i32
  }
  func.func @transform_8(%arg0: i32, %arg1: i32) -> (i32, i32) {
    %c0_i32 = arith.constant 0 : i32
    %c0_i32_0 = arith.constant 0 : i32
    %c0_i32_1 = arith.constant 0 : i32
    return %c0_i32, %c0_i32_0 : i32, i32
  }
  func.func @transform_9(%arg0: i32, %arg1: i32) -> (i32, i32, i32) {
    %c0_i32 = arith.constant 0 : i32
    %c0_i32_0 = arith.constant 0 : i32
    return %arg0, %arg1, %c0_i32 : i32, i32, i32
  }
}

</mosaic_0001>

<bundles_post_ra>
// kernel: mlp_network_forward.1
= control target key start
LH: loop header
LB: loop body
LE: loop exit
PB: predicated region body
PF: predicated region fallthrough
CT: control target
= control target key end

     0   :  { %s760_s30 = smov 0   ;;  %s762_s10 = smov 0   ;;  %s830_s0 = inlined_call_operand.vmem [shape: bf16[2,16,16], index: 0, kind: input, shape index: {}]   ;;  %s831_s1 = inlined_call_operand.vmem [shape: bf16[16,32], index: 1, kind: input, shape index: {}]   ;;  %s832_s2 = inlined_call_operand.vmem [shape: bf16[16,32], index: 2, kind: input, shape index: {}]   ;;  %s833_s3 = inlined_call_operand.vmem [shape: bf16[16,32], index: 3, kind: input, shape index: {}]   ;;  %s834_s4 = inlined_call_operand.vmem [shape: f32[1,32], index: 4, kind: input, shape index: {}]   ;;  %s835_s5 = inlined_call_operand.vmem [shape: bf16[32,32], index: 5, kind: input, shape index: {}]   ;;  %s836_s6 = inlined_call_operand.vmem [shape: f32[1,32], index: 6, kind: input, shape index: {}]   ;;  %s837_s7 = inlined_call_operand.vmem [shape: bf16[32,8], index: 7, kind: input, shape index: {}]   ;;  %s838_s8 = inlined_call_operand.vmem [shape: f32[1,8], index: 8, kind: input, shape index: {}]   ;;  %s839_s9 = inlined_call_operand.vmem [shape: f32[2,8,8], index: 9, kind: output, shape index: {}]  }
   0x1   :  { %s764_s11 = smov 0  }
   0x2 LB: > { %s31_s12 = sadd.s32 1, %s704_s10  ;;  %p607_p0 = scmp.ge.s32.totalorder %s708_s11, 1  ;;  %s708_s11 = sphi %s764_s11, %s19_s11   ;;  %s704_s10 = sphi %s762_s10, %s841_s10   ;;  %s700_s30 = sphi %s760_s30, %s840_s30  }
   0x3   : > { %p33_p1 = scmp.ge.s32.totalorder %s31_s12, 2  ;;  %p301_p2 = scmp.lt.s32.totalorder %s708_s11, 3 }
   0x5   : > { %s843_s12 = smov (%p33_p1, %s31_s12), 0  ;;  %p302_p3 = pnand %p607_p0, %p301_p2 }
   0x6   : > { %p339_p4 = scmp.lt.s32.totalorder (!%p302_p3), %s700_s30, 1 }
   0x7   : > { %305 = sbr.rel (%p302_p3) target bundleno = 431 (0x1af), region = 56 }
   0xc   : > { %v652_v0 = vld [vmem:[%s831_s1] sm:$0xff]  ;;  %s845_s30 = smov (!%p339_p4, %s700_s30), 1  ;;  %vm381_vm0 = vcmask 130048   ;;  %v656_v10 = vld [vmem:[%s835_s5 + $0x8] sm:$0xff]  ;;  %vm473_vm1 = vcmask 261120   ;;  %vm528_vm2 = vcmask 64512  }
   0xd   : > { %v654_v1 = vld [vmem:[%s833_s3] sm:$0xff]  ;;  %414 = vmatpush.bf16.msra.mxu1 %v652_v0  ;;  %s650_s19 = sshll.u32 %s845_s30, 3  ;;  %483 = vmatpush.bf16.msra.mxu3 %v656_v10  ;;  %v658_v12 = vld [vmem:[%s837_s7 + $0x8] sm:$0xff] }
   0xe   : > { %v653_v2 = vld [vmem:[%s832_s2] sm:$0xff]  ;;  %439 = vmatpush.bf16.msra.mxu2 %v654_v1  ;;  %s343_s22 = scalar_lea.vmem %s830_s0, %s650_s19  ;;  %s350_s23 = scalar_lea.vmem %s839_s9, %s650_s19 }
   0xf   : > { %392 = vmatpush.bf16.msra.mxu0 %v653_v2  ;;  %v357_v3 = vld [vmem:[%s343_s22] sm:$0xf] }
  0x10   : > { %v651_v4 = vld [vmem:[%s343_s22] sm:$0xff]  ;;  %624 = vmatmul.msk.bf16.vlgmr.msra.gmra.mxu1 %vm381_vm0, %v357_v3 }
  0x11   : > { %v422_v5 = vrot.slane %v651_v4, 1  ;;  %v369_v6 = vshrl.u32 %v651_v4, 16  ;;  %v371_v7 = vshll.u32 %v651_v4, 16  ;;  %v655_v11 = vld [vmem:[%s835_s5] sm:$0xff] }
  0x12   : > { %484 = vmatpush.bf16.msra.mxu3 %v655_v11  ;;  %v657_v13 = vld [vmem:[%s837_s7] sm:$0xff] }
  0x13   : > { %629 = vmatmul.msk.bf16.vlgmr.msra.gmra.mxu2 %vm381_vm0, %v422_v5  ;;  %v373_v8 = vrot.slane %v371_v7, 1  ;;  %521 = vmatpush.bf16.msrb.mxu0 %v658_v12  ;;  %v683_v18 = vld [vmem:[%s834_s4] ss:$0 sm:$0xff] }
  0x14   : > { %v684_v26 = vld [vmem:[%s836_s6] ss:$0 sm:$0xff] }
  0x15   : > { %v374_v9 = vor.u32 %v373_v8, %v369_v6  ;;  %v685_v32 = vld [vmem:[%s838_s8] ss:$0 sm:$0xff] }
  0x17   : > { %619 = vmatmul.msk.bf16.vlgmr.msra.gmra.mxu0 %vm381_vm0, %v374_v9 }
  0x18   : > { %522 = vmatpush.bf16.msrb.mxu0 %v657_v13 }
  0x8d   : > { %v416_v14 = vpop.f32.mrf.mxu1 }
  0x94   : > { %v394_v15 = vpop.f32.mrf.mxu0 }
  0x95   : > { %v417_v16 = vadd.f32 %v416_v14, %v394_v15  ;;  %v418_v17 = vpop.f32.mrf.mxu1 }
  0x96   : > { %v441_v19 = vpop.f32.mrf.mxu2 }
  0x97   : > { %v445_v20 = vadd.f32 %v441_v19, %v417_v16 }
  0x99   : > { %v450_v21 = vadd.f32 %v683_v18, %v445_v20 }
  0x9b   : > { %v451_v22 = vmax.f32 %v450_v21, 0.0 }
  0x9c   : > { %v396_v23 = vpop.f32.mrf.mxu0 }
  0x9d   : > { %v452_v24 = vpack.c.bf16 %v451_v22, %v451_v22 }
  0x9e   : > { %v443_v25 = vpop.f32.mrf.mxu2 }
  0x9f   : > { %638 = vmatmul.msk.bf16.vlgmr.msra.gmra.mxu3 %vm473_vm1, %v452_v24 }
 0x122   : > { %v486_v27 = vpop.f32.mrf.mxu3 }
 0x123   : > { %v487_v28 = vadd.f32 %v684_v26, %v486_v27 }
 0x125   : > { %v490_v29 = vmax.f32 %v487_v28, 0.0 }
 0x127   : > { %v491_v30 = vpack.c.bf16 %v490_v29, %v490_v29 }
 0x129   : > { %647 = vmatmul.msk.bf16.vlgmr.msrb.gmra.mxu0 %vm473_vm1, %v491_v30 }
 0x12a   : > { %v488_v31 = vpop.f32.mrf.mxu3 }
 0x1a6   : > { %v524_v33 = vpop.f32.mrf.mxu0 }
 0x1a7   : > { %v525_v34 = vadd.f32 %v685_v32, %v524_v33 }
 0x1a9   : > { %529 = vst.msk [vmem:[%s350_s23] sm:$0xff] %vm528_vm2, %v525_v34 }
 0x1ae   : > { %v526_v35 = vpop.f32.mrf.mxu0 }
 0x1af PF: > { %s19_s11 = sadd.s32 1, %s708_s11   ;;  %s840_s30 = smov %s704_s10 }
 0x1b0   : > { %p16_p5 = scmp.ge.s32.totalorder %s19_s11, 4   ;;  %s841_s10 = smov %s843_s12 }
 0x1b2   :  { %18 = sbr.rel (!%p16_p5) target bundleno = 2 (0x2), region = 87 }

</bundles_post_ra>
